<compile_context>
chip_gen: v5e
topology: v5e:2x2
jax: 0.10.0
libtpu: 0.0.40
codegen_flags: <defaults>
</compile_context>

<pallas_src>
import jax
import jax.numpy as jnp
from jax.experimental import pallas as pl
from jax.experimental.pallas import tpu as pltpu


def _identity_quantize_kernel(x_ref, o_ref):
    # Base Quantizer.quantize(x) == x; elementwise pass-through on the tile.
    # TODO(synk): subclasses override quantize(); insert real quant math here.
    o_ref[...] = x_ref[...]


def pallas_identity_quantize(x, *, alias_input=False):
    """Streams x through the (identity) quantize kernel, preserving shape/dtype.

    `alias_input=True` reuses the input HBM buffer for the output
    (input_output_aliases={0: 0}) — useful for shape/dtype-preserving subclass
    quantization where the input is dead afterwards.
    """
    orig_shape = x.shape
    orig_dtype = x.dtype
    n_elem = x.size
    if n_elem == 0:
        return x

    itemsize = jnp.dtype(orig_dtype).itemsize
    # Minimum sublane tile scales with packing: 8 rows f32, 16 bf16, 32 int8.
    min_sublanes = max(8, 32 // itemsize)

    # Widest lane-dense last dim (large multiple of 128) that divides exactly:
    # reshape is free, no padding copy.  Fallback: pad a <128-element tail.
    lanes = None
    for cand in (1024, 512, 256, 128):
        if n_elem % cand == 0:
            lanes = cand
            break
    x_flat = x.reshape(-1)
    padded = n_elem
    if lanes is None:
        lanes = 128
        padded = ((n_elem + lanes - 1) // lanes) * lanes
        x_flat = jnp.pad(x_flat, (0, padded - n_elem))
    rows = padded // lanes
    x2d = x_flat.reshape(rows, lanes)

    # ~2 MiB blocks (4 live double-buffered buffers ~= 8 MiB of VMEM).
    TARGET_BLOCK_BYTES = 2 * 1024 * 1024
    block_rows = max(min_sublanes, TARGET_BLOCK_BYTES // (lanes * itemsize))
    block_rows = (block_rows // min_sublanes) * min_sublanes
    if block_rows >= rows:
        block_rows = rows  # full second-to-last dim is always a legal tile
    grid = (pl.cdiv(rows, block_rows),)

    out2d = pl.pallas_call(
        _identity_quantize_kernel,
        out_shape=jax.ShapeDtypeStruct((rows, lanes), orig_dtype),
        grid_spec=pltpu.PrefetchScalarGridSpec(
            num_scalar_prefetch=0,
            grid=grid,
            in_specs=[pl.BlockSpec((block_rows, lanes), lambda i: (i, 0))],
            out_specs=pl.BlockSpec((block_rows, lanes), lambda i: (i, 0)),
        ),
        compiler_params=pltpu.CompilerParams(
            # Shards the grid across TensorCores on multi-TC chips (v7x).
            dimension_semantics=("parallel",),
            # Headroom above v5e's 16 MiB default; safe on v6e/v7x.
            vmem_limit_bytes=32 * 1024 * 1024,
        ),
        # Pure memory op: 1 read + 1 write of the tensor, zero flops.
        cost_estimate=pl.CostEstimate(
            flops=0, transcendentals=0, bytes_accessed=2 * n_elem * itemsize),
        input_output_aliases=({0: 0} if alias_input else {}),
    )(x2d)

    out_flat = out2d.reshape(-1)
    if padded != n_elem:
        out_flat = out_flat[:n_elem]
    return out_flat.reshape(orig_shape)


def quantizer_forward(x, group_size="tensor", bit_width=None, quantize=True,
                      quantize_fn=None):
    """Pallas implementation of Quantizer.forward.

    `group_size` / `bit_width` only affect regroup()/__repr__ in the PyTorch
    base class, never forward(); kept for interface parity.
    """
    if not quantize:
        return x
    if quantize_fn is None:
        # Base-class quantize() is the identity: launching a copy kernel would
        # be pure overhead (full HBM read + write + launch), so short-circuit.
        return x
    return quantize_fn(x)


def quantizer_regroup(x, group_size="tensor"):
    """Pure-reshape helper matching Quantizer.regroup (no kernel needed)."""
    if group_size == "tensor":
        return x.reshape(-1)
    if group_size == "channel":
        return x.reshape(x.shape[0], -1)
    return x.reshape(-1, group_size)


if __name__ == "__main__":
    key = jax.random.PRNGKey(0)
    # Small NCHW activation consistent with a conv quantizer use-case.
    x = jax.random.normal(key, (2, 4, 16, 16), dtype=jnp.float32)

    # Fast path: base-class quantize() is identity -> no kernel launch.
    y_fast = quantizer_forward(x, group_size="tensor", bit_width=None)
    assert y_fast.shape == x.shape and y_fast.dtype == x.dtype
    assert bool(jnp.all(y_fast == x))

    # Kernel path: route forward() through the Pallas streaming quantize
    # kernel (what a real subclass quantize() would use).
    y = quantizer_forward(x, quantize_fn=pallas_identity_quantize)
    y = jax.block_until_ready(y)
    assert y.shape == x.shape and y.dtype == x.dtype
    assert bool(jnp.all(y == x))

    # Also exercise the non-multiple-of-128 tail path.
    x_odd = jax.random.normal(jax.random.PRNGKey(0), (3, 5, 7), dtype=jnp.float32)
    y_odd = jax.block_until_ready(pallas_identity_quantize(x_odd))
    assert y_odd.shape == x_odd.shape and bool(jnp.all(y_odd == x_odd))

    print("KERNEL_OK")
</pallas_src>

<mosaic_0001>
module attributes {stable_mosaic.version = 11 : i64} {
  func.func @_identity_quantize_kernel(%arg0: i32, %arg1: memref<2x1024xf32, #tpu.memory_space<vmem>>, %arg2: memref<2x1024xf32, #tpu.memory_space<vmem>>) attributes {dimension_semantics = [#tpu.dimension_semantics<parallel>], iteration_bounds = array<i64: 1>, scalar_prefetch = 0 : i64, scratch_operands = 0 : i64, tpu.core_type = #tpu.core_type<tc>, window_params = [{transform_indices = @transform_0, window_bounds = array<i64: 2, 1024>}, {transform_indices = @transform_1, window_bounds = array<i64: 2, 1024>}]} {
    %c0 = arith.constant 0 : index
    %c0_0 = arith.constant 0 : index
    %0 = vector.load %arg1[%c0, %c0_0] : memref<2x1024xf32, #tpu.memory_space<vmem>>, vector<2x1024xf32>
    %c0_1 = arith.constant 0 : index
    %c0_2 = arith.constant 0 : index
    %1 = vector.load %arg2[%c0_1, %c0_2] : memref<2x1024xf32, #tpu.memory_space<vmem>>, vector<2x1024xf32>
    tpu.vector_store %arg2[%c0_1, %c0_2], %0 {strides = array<i32>} : memref<2x1024xf32, #tpu.memory_space<vmem>>, vector<2x1024xf32>,
    return
  }
  func.func @transform_0(%arg0: i32) -> (i32, i32) {
    %c0_i32 = arith.constant 0 : i32
    %c0_i32_0 = arith.constant 0 : i32
    return %arg0, %c0_i32 : i32, i32
  }
  func.func @transform_1(%arg0: i32) -> (i32, i32) {
    %c0_i32 = arith.constant 0 : i32
    %c0_i32_0 = arith.constant 0 : i32
    return %arg0, %c0_i32 : i32, i32
  }
}

</mosaic_0001>

<bundles_post_ra>
// kernel: tpu_custom_call.1
= control target key start
LH: loop header
LB: loop body
LE: loop exit
PB: predicated region body
PF: predicated region fallthrough
CT: control target
= control target key end

     0   :  { %6 = vsyncpa [#allocation3], 0  ;;  %s116_s0 = inlined_call_operand.hbm [shape: f32[2,1024], index: 0, kind: input, shape index: {}]   ;;  %s117_s1 = inlined_call_operand.hbm [shape: f32[2,1024], index: 1, kind: output, shape index: {}]  }
   0x1   :  { %7 = vsyncpa [#allocation4], 0  ;;  %s13_s8 = sshll.u32 %s116_s0, 4  ;;  %s98_s9 = smov [#allocation2]   ;;  %s14_s8 = int_to_ptr.hbm [resolvable:$true] %s13_s8 }
   0x2   :  { %s15_s10 = sshll.u32 %s98_s9, 4  ;;  %s16_s10 = int_to_ptr.vmem [resolvable:$true] %s15_s10 }
   0x3   :  { %18 = dma.hbm_to_vmem [thread:$0]  %s14_s8, 256, %s16_s10, [#allocation3]  }
   0x4   :  { %94 = dma.done.wait [#allocation3], 256  }
   0x5   :  { %95 = vsyncadd [#allocation3], 4294967040  ;;  %s99_s11 = smov [#allocation5]   ;;  %s34_s15 = sshll.u32 %s117_s1, 4  ;;  %v23_v0 = vld [vmem:[#allocation2] sm:$0xff]  ;;  %v24_v1 = vld [vmem:[#allocation2 + $0x8] sm:$0xff]  ;;  %s35_s15 = int_to_ptr.hbm [resolvable:$true] %s34_s15 }
   0x6   :  { %s32_s12 = sshll.u32 %s99_s11, 4  ;;  %25 = vst [vmem:[#allocation5] sm:$0xff] %v23_v0  ;;  %s33_s12 = int_to_ptr.vmem [resolvable:$true] %s32_s12 }
   0x7   :  { %26 = vst [vmem:[#allocation5 + $0x8] sm:$0xff] %v24_v1 }
   0x8   :  { %37 = dma.vmem_to_hbm [thread:$0]  %s33_s12, 256, %s35_s15, [#allocation4]  }
   0x9   :  { %96 = dma.done.wait [#allocation4], 256  }
   0xa   :  { %97 = vsyncadd [#allocation4], 4294967040 }
   0xb   :  { %42 = vsyncpa [#allocation3], 1 }
   0xc   :  { %43 = vsyncpa [#allocation4], 1 }

</bundles_post_ra>
